<compile_context>
chip_gen: v5e
topology: v5e:2x2
jax: 0.10.0
libtpu: 0.0.40
codegen_flags: <defaults>
</compile_context>

<pallas_src>
import functools

import numpy as np
import jax
import jax.numpy as jnp
from jax.experimental import pallas as pl
from jax.experimental.pallas import tpu as pltpu

EPS = 1e-8
_LANE = 128


def _round_up(x, m):
    return (x + m - 1) // m * m


def hamming_window(L):
    n = np.arange(L)
    return (0.54 - 0.46 * np.cos(2.0 * np.pi * n / L)).astype(np.float32)


# ---------------------------------------------------------------------------
# kernel
# ---------------------------------------------------------------------------
def _decoder_kernel(en_ref, xi_ref, wdec_ref, wift_ref, invenv_ref, o_ref,
                    *, Fp, hop_pad, T, bb):
    # en_ref     : [bb*T, Fp]          f32   ||inputs_en||_C rows (freq zero padded)
    # xi_ref     : [bb*T, nw1_pad]     bf16  conv-input rows (+ ones col = bias, zero pad)
    # wdec_ref   : [nw1_pad, 3*Fp]     bf16  fused ConvTranspose2d (A | P_re | P_im)
    # wift_ref   : [2*Fp, 2*hop_pad]   bf16  windowed irfft basis, half frames in
    #                                        separate 128-aligned lane groups
    # invenv_ref : [T+1, hop_pad]      f32   1 / OLA'd window^2 envelope (0 in pad lanes)
    # o_ref      : [bb, T+1, hop_pad]  f32   overlap-added waveform segments (lane dense)

    # --- fused deconv: Am, P_re, P_im in a single MXU launch -----------------
    dec = jnp.dot(xi_ref[...], wdec_ref[...],
                  preferred_element_type=jnp.float32)            # [bb*T, 3*Fp]
    am = jnp.maximum(dec[:, 0 * Fp:1 * Fp], 0.0)                 # relu(conv_A)
    pr = dec[:, 1 * Fp:2 * Fp]
    pi = dec[:, 2 * Fp:3 * Fp]

    # --- scaling: single EUP op (rsqrt); padded bins stay exactly 0 ----------
    # (en, am, pr, pi are all 0 in columns >= F, and rsqrt(eps^2) is finite.)
    scale = en_ref[...] * am * jax.lax.rsqrt(pr * pr + pi * pi + EPS * EPS)
    x_cat = jnp.concatenate([scale * pr, scale * pi], axis=-1)   # [bb*T, 2*Fp]

    # --- windowed onesided irfft of every frame in one matmul ----------------
    frames = jnp.dot(x_cat.astype(wift_ref.dtype), wift_ref[...],
                     preferred_element_type=jnp.float32)         # [bb*T, 2*hop_pad]
    frames = frames.reshape(bb, T, 2 * hop_pad)

    # --- overlap-add (hop == L//2): shifted add on aligned half-frame views --
    fa = frames[:, :, :hop_pad]                  # samples [0, hop) of frame s
    fb = frames[:, :, hop_pad:]                  # samples [hop, L) of frame s
    fb_prev = pltpu.roll(fb, shift=1, axis=1)    # fb_prev[:, s] == fb[:, s-1]
    seg = jax.lax.broadcasted_iota(jnp.int32, (T, hop_pad), 0)
    fb_prev = jnp.where(seg > 0, fb_prev, 0.0)   # segment 0 has no left frame
    inv = invenv_ref[...]
    # TODO(synk): this is two lane-dense stores (T rows + 1 trailing row); a
    # single whole-block store would need an unaligned sublane concat/reshape.
    o_ref[:, :T, :] = (fa + fb_prev) * inv[:T, :]
    o_ref[:, T:, :] = fb[:, T - 1:, :] * inv[T:, :]


# ---------------------------------------------------------------------------
# constant construction (host-side numpy; folded weights, basis, envelope)
# ---------------------------------------------------------------------------
def _build_decoder_constants(params, *, N, L, stride, T, win, mxu_dtype):
    kw, csw = 5, 2
    F = (win - 1) * csw + kw
    assert F == L // 2 + 1
    Fp = _round_up(F, _LANE)
    hop = stride
    hop_pad = _round_up(hop, _LANE)
    nw1 = N * win + 1
    nw1_pad = _round_up(nw1, 16)        # clean bf16 sublane tiles for the K dim

    wa = np.asarray(params['wa'], np.float32)          # [N, 1, 1, 5]
    ba = np.asarray(params['ba'], np.float32)          # [1]
    wp = np.asarray(params['wp'], np.float32)          # [N, 2, 1, 5]
    bp = np.asarray(params['bp'], np.float32)          # [2]

    def fold_deconv(w_nk, bias):                       # w_nk: [N, 5] -> [nw1_pad, Fp]
        m = np.zeros((N, win, Fp), np.float32)
        for w in range(win):
            for k in range(kw):
                m[:, w, w * csw + k] += w_nk[:, k]
        out = np.zeros((nw1_pad, Fp), np.float32)
        out[:N * win] = m.reshape(N * win, Fp)
        out[N * win, :F] = bias                        # bias only on real bins
        return out

    wdec = np.concatenate([fold_deconv(wa[:, 0, 0, :], ba[0]),
                           fold_deconv(wp[:, 0, 0, :], bp[0]),
                           fold_deconv(wp[:, 1, 0, :], bp[1])], axis=1)

    # onesided irfft basis with hamming window and 1/L normalization folded in;
    # the two half-frames go into separate 128-aligned lane groups.
    window = hamming_window(L).astype(np.float64)
    k = np.arange(F)[:, None]
    n = np.arange(L)[None, :]
    ang = 2.0 * np.pi * k * n / L
    wk = np.where((k == 0) | (k == L // 2), 1.0, 2.0)
    cos_b = (wk * np.cos(ang) / L) * window[None, :]
    sin_b = (-wk * np.sin(ang) / L) * window[None, :]
    wift = np.zeros((2 * Fp, 2 * hop_pad), np.float32)
    wift[:F, :hop] = cos_b[:, :hop]
    wift[:F, hop_pad:hop_pad + hop] = cos_b[:, hop:]
    wift[Fp:Fp + F, :hop] = sin_b[:, :hop]
    wift[Fp:Fp + F, hop_pad:hop_pad + hop] = sin_b[:, hop:]

    # reciprocal of the overlap-added squared-window envelope, [T+1, hop_pad]
    out_len = (T - 1) * hop + L
    env = np.zeros(out_len, np.float64)
    for t in range(T):
        env[t * hop:t * hop + L] += window ** 2
    invenv = np.zeros((T + 1, hop_pad), np.float32)
    invenv[:, :hop] = (1.0 / env).astype(np.float32).reshape(T + 1, hop)

    return (jnp.asarray(wdec, mxu_dtype), jnp.asarray(wift, mxu_dtype),
            jnp.asarray(invenv), Fp, hop_pad, nw1_pad, out_len)


# ---------------------------------------------------------------------------
# block selection
# ---------------------------------------------------------------------------
def _choose_batch_block(B, T, bytes_per_row, target_block_bytes=16 << 20):
    """Pick batches-per-block bb: bb | B and bb*T % 8 == 0 (or bb == B)."""
    divs = [d for d in range(1, B + 1) if B % d == 0]
    valid = [d for d in divs if (d * T) % 8 == 0]
    if not valid:
        return B                                   # single full-extent block
    rows_cap = max(8, target_block_bytes // max(bytes_per_row, 1))
    fitting = [d for d in valid if d * T <= rows_cap]
    bb = max(fitting) if fitting else min(valid)
    # Prefer >= 2 grid steps (megacore / v7x dual TensorCore) once a half-size
    # block is still large enough to amortize the ~0.35 us per-step overhead.
    half = B // 2
    if bb == B and half in valid and half * T >= 256:
        bb = half
    return bb


# ---------------------------------------------------------------------------
# wrapper
# ---------------------------------------------------------------------------
def decoder_forward(inputs_en, xi, params, L, stride=None,
                    mxu_dtype=jnp.bfloat16):
    if stride is None:
        stride = L // 2
    # TODO(synk): general hop != L//2 would need strided in-kernel accumulation;
    # the module default (stride = L//2) is what is implemented here.
    assert 2 * stride == L, "overlap-add path assumes hop == L // 2"

    B, C, T, F = inputs_en.shape
    _, N, T2, win = xi.shape
    assert T2 == T and (win - 1) * 2 + 5 == F == L // 2 + 1

    (wdec, wift, invenv, Fp, hop_pad, nw1_pad, out_len) = _build_decoder_constants(
        params, N=N, L=L, stride=stride, T=T, win=win, mxu_dtype=mxu_dtype)
    hop = stride
    nw1 = N * win + 1

    # ||inputs_en||_C computed once in the wrapper: the kernel streams a single
    # f32 [B*T, Fp] row block instead of the C-channel tensor and needs no sqrt.
    en_rows = jnp.sqrt(jnp.sum(jnp.square(inputs_en.astype(jnp.float32)),
                               axis=1))                              # [B, T, F]
    en_rows = jnp.pad(en_rows.reshape(B * T, F), ((0, 0), (0, Fp - F)))

    # xi NCHW -> [B*T, N*win] (+ ones column so the bias rides the matmul),
    # zero padded to nw1_pad for clean K tiles.
    xi_rows = jnp.transpose(xi, (0, 2, 1, 3)).reshape(B * T, N * win)
    xi_rows = jnp.concatenate(
        [xi_rows, jnp.ones((B * T, 1), xi_rows.dtype)], axis=-1)
    xi_rows = jnp.pad(xi_rows, ((0, 0), (0, nw1_pad - nw1))).astype(mxu_dtype)

    # Per-row VMEM estimate: double-buffered inputs + f32 intermediates + output.
    bytes_per_row = (Fp * 4 * 2 + nw1_pad * 2 * 2
                     + Fp * 4 * 7 + Fp * 2 * 2
                     + hop_pad * 4 * 4
                     + (hop_pad * 4 * 2 * (T + 1)) // max(T, 1))
    bb = _choose_batch_block(B, T, bytes_per_row)
    nb = B // bb

    kernel = functools.partial(_decoder_kernel, Fp=Fp, hop_pad=hop_pad, T=T, bb=bb)

    out = pl.pallas_call(
        kernel,
        out_shape=jax.ShapeDtypeStruct((B, T + 1, hop_pad), jnp.float32),
        grid=(nb,),
        in_specs=[
            pl.BlockSpec((bb * T, Fp), lambda i: (i, 0)),
            pl.BlockSpec((bb * T, nw1_pad), lambda i: (i, 0)),
            # NOTE: the constant operands below total only a few hundred KB, so
            # single-buffering them (pipeline_mode=pl.Buffered(1)) buys
            # negligible VMEM headroom here and is omitted.
            pl.BlockSpec((nw1_pad, 3 * Fp), lambda i: (0, 0)),
            pl.BlockSpec((2 * Fp, 2 * hop_pad), lambda i: (0, 0)),
            pl.BlockSpec((T + 1, hop_pad), lambda i: (0, 0)),
        ],
        out_specs=pl.BlockSpec((bb, T + 1, hop_pad), lambda i: (i, 0, 0)),
        compiler_params=pltpu.CompilerParams(
            dimension_semantics=("parallel",),
            vmem_limit_bytes=48 * 1024 * 1024),
    )(en_rows, xi_rows, wdec, wift, invenv)

    # strip lane padding and flatten the (T+1, hop) segments to the waveform
    return out[:, :, :hop].reshape(B, out_len)      # out_len == (T-1)*stride + L


# ---------------------------------------------------------------------------
# straight JAX port of the torch module (validation only)
# ---------------------------------------------------------------------------
def _decoder_reference(inputs_en, xi, params, L, stride):
    wa = jnp.asarray(params['wa'], jnp.float32)
    ba = jnp.asarray(params['ba'], jnp.float32)
    wp = jnp.asarray(params['wp'], jnp.float32)
    bp = jnp.asarray(params['bp'], jnp.float32)
    B, _, T, win = xi.shape
    F = (win - 1) * 2 + 5

    def deconv(x, w, b):                 # ConvTranspose2d kernel [1,5] stride [1,2]
        O = w.shape[1]
        out = jnp.zeros((B, O, T, F), jnp.float32)
        for wi in range(win):
            for k in range(5):
                out = out.at[:, :, :, wi * 2 + k].add(
                    jnp.einsum('bnt,no->bot', x[:, :, :, wi], w[:, :, 0, k]))
        return out + b[None, :, None, None]

    Am = jnp.maximum(deconv(xi, wa, ba), 0.0)                    # [B, 1, T, F]
    P = deconv(xi, wp, bp)                                       # [B, 2, T, F]
    norm_P = jnp.linalg.norm(P, axis=1, keepdims=True) + EPS
    P = P / norm_P
    x = jnp.linalg.norm(inputs_en, axis=1, keepdims=True) * Am * P
    spec = x[:, 0] + 1j * x[:, 1]                                # [B, T, F]
    frames = jnp.fft.irfft(spec, n=L, axis=-1)                   # [B, T, L]
    window = jnp.asarray(hamming_window(L))
    frames = frames * window[None, None, :]
    out_len = (T - 1) * stride + L
    y = jnp.zeros((B, out_len), jnp.float32)
    env = jnp.zeros((out_len,), jnp.float32)
    for t in range(T):
        y = y.at[:, t * stride:t * stride + L].add(frames[:, t])
        env = env.at[t * stride:t * stride + L].add(window ** 2)
    return y / env[None, :]


if __name__ == "__main__":
    # Decoder(N=4, L=16): stride = L//2 = 8, F = L//2+1 = 9, conv input Win = 3
    N, L = 4, 16
    stride = L // 2
    win = 3
    F = (win - 1) * 2 + 5
    B, C, T = 2, 4, 8

    key = jax.random.PRNGKey(0)
    k1, k2, k3, k4, k5, k6 = jax.random.split(key, 6)
    params = {
        'wa': jax.random.normal(k1, (N, 1, 1, 5), jnp.float32) * 0.2,  # conv_A.weight
        'ba': jax.random.normal(k2, (1,), jnp.float32) * 0.1,          # conv_A.bias
        'wp': jax.random.normal(k3, (N, 2, 1, 5), jnp.float32) * 0.2,  # conv_P.weight
        'bp': jax.random.normal(k4, (2,), jnp.float32) * 0.1,          # conv_P.bias
    }
    inputs_en = jax.random.normal(k5, (B, C, T, F), jnp.float32)
    xi = jax.random.normal(k6, (B, N, T, win), jnp.float32)

    y = decoder_forward(inputs_en, xi, params, L, stride)
    y = jax.block_until_ready(y)
    assert y.shape == (B, (T - 1) * stride + L)
    assert bool(jnp.all(jnp.isfinite(y)))

    # Validate against the plain-JAX port.  Compare the pre-envelope
    # overlap-add (difference weighted by env): the 1/env division amplifies
    # benign bf16/rsqrt rounding by up to 1/hamming(0)^2 (~156x) at the
    # outermost samples, which would make a raw check needlessly brittle.
    y_ref = _decoder_reference(inputs_en, xi, params, L, stride)
    window = hamming_window(L)
    env = np.zeros((T - 1) * stride + L, np.float32)
    for t in range(T):
        env[t * stride:t * stride + L] += window ** 2
    err = float(jnp.max(jnp.abs((y - y_ref) * jnp.asarray(env))))
    assert err < 5e-2, f"mismatch vs reference (env-weighted max abs err {err})"

    print("KERNEL_OK")
</pallas_src>

<mosaic_0001>
module attributes {stable_mosaic.version = 11 : i64} {
  func.func @_decoder_kernel(%arg0: i32, %arg1: memref<16x128xf32, #tpu.memory_space<vmem>>, %arg2: memref<16x16xbf16, #tpu.memory_space<vmem>>, %arg3: memref<16x384xbf16, #tpu.memory_space<vmem>>, %arg4: memref<256x256xbf16, #tpu.memory_space<vmem>>, %arg5: memref<9x128xf32, #tpu.memory_space<vmem>>, %arg6: memref<2x9x128xf32, #tpu.memory_space<vmem>>) attributes {dimension_semantics = [#tpu.dimension_semantics<parallel>], iteration_bounds = array<i64: 1>, scalar_prefetch = 0 : i64, scratch_operands = 0 : i64, tpu.core_type = #tpu.core_type<tc>, window_params = [{transform_indices = @transform_0, window_bounds = array<i64: 16, 128>}, {transform_indices = @transform_1, window_bounds = array<i64: 16, 16>}, {pipeline_mode = #tpu.pipeline_mode<synchronous>, transform_indices = @transform_2, window_bounds = array<i64: 16, 384>}, {pipeline_mode = #tpu.pipeline_mode<synchronous>, transform_indices = @transform_3, window_bounds = array<i64: 256, 256>}, {pipeline_mode = #tpu.pipeline_mode<synchronous>, transform_indices = @transform_4, window_bounds = array<i64: 9, 128>}, {transform_indices = @transform_5, window_bounds = array<i64: 2, 9, 128>}]} {
    %c0 = arith.constant 0 : index
    %c0_0 = arith.constant 0 : index
    %0 = vector.load %arg2[%c0, %c0_0] : memref<16x16xbf16, #tpu.memory_space<vmem>>, vector<16x16xbf16>
    %c0_1 = arith.constant 0 : index
    %c0_2 = arith.constant 0 : index
    %1 = vector.load %arg3[%c0_1, %c0_2] : memref<16x384xbf16, #tpu.memory_space<vmem>>, vector<16x384xbf16>
    %cst = arith.constant dense<0.000000e+00> : vector<16x384xf32>
    %2 = tpu.matmul %0, %1, %cst {dimension_numbers = #tpu.dot_dimension_numbers<[1], [0], [0], [1], [0, 0, 1, 1], [], []>} : vector<16x16xbf16>, vector<16x384xbf16>, vector<16x384xf32> -> vector<16x384xf32>
    %3 = vector.extract_strided_slice %2 {offsets = [0, 0], sizes = [16, 128], strides = [1, 1]} : vector<16x384xf32> to vector<16x128xf32>
    %cst_3 = arith.constant 0.000000e+00 : f32
    %4 = vector.broadcast %cst_3 : f32 to vector<16x128xf32>
    %5 = arith.maximumf %3, %4 : vector<16x128xf32>
    %6 = vector.extract_strided_slice %2 {offsets = [0, 128], sizes = [16, 128], strides = [1, 1]} : vector<16x384xf32> to vector<16x128xf32>
    %7 = vector.extract_strided_slice %2 {offsets = [0, 256], sizes = [16, 128], strides = [1, 1]} : vector<16x384xf32> to vector<16x128xf32>
    %c0_4 = arith.constant 0 : index
    %c0_5 = arith.constant 0 : index
    %8 = vector.load %arg1[%c0_4, %c0_5] : memref<16x128xf32, #tpu.memory_space<vmem>>, vector<16x128xf32>
    %9 = arith.mulf %8, %5 : vector<16x128xf32>
    %10 = arith.mulf %6, %6 : vector<16x128xf32>
    %11 = arith.mulf %7, %7 : vector<16x128xf32>
    %12 = arith.addf %10, %11 : vector<16x128xf32>
    %cst_6 = arith.constant 1.000000e-16 : f32
    %13 = vector.broadcast %cst_6 : f32 to vector<16x128xf32>
    %14 = arith.addf %12, %13 : vector<16x128xf32>
    %15 = math.rsqrt %14 : vector<16x128xf32>
    %16 = arith.mulf %9, %15 : vector<16x128xf32>
    %17 = arith.mulf %16, %6 : vector<16x128xf32>
    %18 = arith.mulf %16, %7 : vector<16x128xf32>
    %19 = tpu.concatenate %17, %18 in 1 : vector<16x128xf32>, vector<16x128xf32> -> vector<16x256xf32>
    %20 = arith.truncf %19 : vector<16x256xf32> to vector<16x256xbf16>
    %c0_7 = arith.constant 0 : index
    %c0_8 = arith.constant 0 : index
    %21 = vector.load %arg4[%c0_7, %c0_8] : memref<256x256xbf16, #tpu.memory_space<vmem>>, vector<256x256xbf16>
    %cst_9 = arith.constant dense<0.000000e+00> : vector<16x256xf32>
    %22 = tpu.matmul %20, %21, %cst_9 {dimension_numbers = #tpu.dot_dimension_numbers<[1], [0], [0], [1], [0, 0, 1, 1], [], []>} : vector<16x256xbf16>, vector<256x256xbf16>, vector<16x256xf32> -> vector<16x256xf32>
    %23 = vector.shape_cast %22 : vector<16x256xf32> to vector<2x8x256xf32>
    %24 = vector.extract_strided_slice %23 {offsets = [0, 0, 0], sizes = [2, 8, 128], strides = [1, 1, 1]} : vector<2x8x256xf32> to vector<2x8x128xf32>
    %25 = vector.extract_strided_slice %23 {offsets = [0, 0, 128], sizes = [2, 8, 128], strides = [1, 1, 1]} : vector<2x8x256xf32> to vector<2x8x128xf32>
    %c1_i32 = arith.constant 1 : i32
    %26 = tpu.dynamic_rotate %25 by %c1_i32 dim 1 : vector<2x8x128xf32>, i32 -> vector<2x8x128xf32>
    %27 = tpu.iota {dimensions = array<i32: 0>} : vector<8x128xi32>
    %c0_i32 = arith.constant 0 : i32
    %28 = vector.broadcast %c0_i32 : i32 to vector<8x128xi32>
    %29 = arith.cmpi sgt, %27, %28 : vector<8x128xi32>
    %cst_10 = arith.constant 0.000000e+00 : f32
    %30 = vector.shape_cast %29 : vector<8x128xi1> to vector<1x8x128xi1>
    %31 = vector.broadcast %30 : vector<1x8x128xi1> to vector<2x8x128xi1>
    %32 = vector.broadcast %cst_10 : f32 to vector<2x8x128xf32>
    %33 = arith.select %31, %26, %32 : vector<2x8x128xi1>, vector<2x8x128xf32>
    %c0_11 = arith.constant 0 : index
    %c0_12 = arith.constant 0 : index
    %34 = vector.load %arg5[%c0_11, %c0_12] : memref<9x128xf32, #tpu.memory_space<vmem>>, vector<9x128xf32>
    %35 = arith.addf %24, %33 : vector<2x8x128xf32>
    %36 = vector.extract_strided_slice %34 {offsets = [0, 0], sizes = [8, 128], strides = [1, 1]} : vector<9x128xf32> to vector<8x128xf32>
    %37 = vector.shape_cast %36 : vector<8x128xf32> to vector<1x8x128xf32>
    %38 = vector.broadcast %37 : vector<1x8x128xf32> to vector<2x8x128xf32>
    %39 = arith.mulf %35, %38 : vector<2x8x128xf32>
    %c0_13 = arith.constant 0 : index
    %c0_14 = arith.constant 0 : index
    %c0_15 = arith.constant 0 : index
    %40 = vector.load %arg6[%c0_13, %c0_14, %c0_15] : memref<2x9x128xf32, #tpu.memory_space<vmem>>, vector<2x8x128xf32>
    tpu.vector_store %arg6[%c0_13, %c0_14, %c0_15], %39 {strides = array<i32>} : memref<2x9x128xf32, #tpu.memory_space<vmem>>, vector<2x8x128xf32>,
    %41 = vector.extract_strided_slice %25 {offsets = [0, 7, 0], sizes = [2, 1, 128], strides = [1, 1, 1]} : vector<2x8x128xf32> to vector<2x1x128xf32>
    %42 = vector.extract_strided_slice %34 {offsets = [8, 0], sizes = [1, 128], strides = [1, 1]} : vector<9x128xf32> to vector<1x128xf32>
    %43 = vector.shape_cast %42 : vector<1x128xf32> to vector<1x1x128xf32>
    %44 = vector.broadcast %43 : vector<1x1x128xf32> to vector<2x1x128xf32>
    %45 = arith.mulf %41, %44 : vector<2x1x128xf32>
    %c0_16 = arith.constant 0 : index
    %c8 = arith.constant 8 : index
    %c0_17 = arith.constant 0 : index
    %46 = vector.load %arg6[%c0_16, %c8, %c0_17] : memref<2x9x128xf32, #tpu.memory_space<vmem>>, vector<2x1x128xf32>
    tpu.vector_store %arg6[%c0_16, %c8, %c0_17], %45 {strides = array<i32>} : memref<2x9x128xf32, #tpu.memory_space<vmem>>, vector<2x1x128xf32>,
    return
  }
  func.func @transform_0(%arg0: i32) -> (i32, i32) {
    %c0_i32 = arith.constant 0 : i32
    %c0_i32_0 = arith.constant 0 : i32
    return %arg0, %c0_i32 : i32, i32
  }
  func.func @transform_1(%arg0: i32) -> (i32, i32) {
    %c0_i32 = arith.constant 0 : i32
    %c0_i32_0 = arith.constant 0 : i32
    return %arg0, %c0_i32 : i32, i32
  }
  func.func @transform_2(%arg0: i32) -> (i32, i32) {
    %c0_i32 = arith.constant 0 : i32
    %c0_i32_0 = arith.constant 0 : i32
    %c0_i32_1 = arith.constant 0 : i32
    return %c0_i32, %c0_i32_0 : i32, i32
  }
  func.func @transform_3(%arg0: i32) -> (i32, i32) {
    %c0_i32 = arith.constant 0 : i32
    %c0_i32_0 = arith.constant 0 : i32
    %c0_i32_1 = arith.constant 0 : i32
    return %c0_i32, %c0_i32_0 : i32, i32
  }
  func.func @transform_4(%arg0: i32) -> (i32, i32) {
    %c0_i32 = arith.constant 0 : i32
    %c0_i32_0 = arith.constant 0 : i32
    %c0_i32_1 = arith.constant 0 : i32
    return %c0_i32, %c0_i32_0 : i32, i32
  }
  func.func @transform_5(%arg0: i32) -> (i32, i32, i32) {
    %c0_i32 = arith.constant 0 : i32
    %c0_i32_0 = arith.constant 0 : i32
    %c0_i32_1 = arith.constant 0 : i32
    return %arg0, %c0_i32, %c0_i32_0 : i32, i32, i32
  }
}

</mosaic_0001>

<bundles_post_ra>
// kernel: tpu_custom_call.1
= control target key start
LH: loop header
LB: loop body
LE: loop exit
PB: predicated region body
PF: predicated region fallthrough
CT: control target
= control target key end

     0   :  { %10 = vsyncpa [#allocation3], 0  ;;  %s897_s0 = inlined_call_operand.hbm [shape: f32[16,128], index: 0, kind: input, shape index: {}]   ;;  %s898_s1 = inlined_call_operand.hbm [shape: bf16[16,16], index: 1, kind: input, shape index: {}]   ;;  %s899_s2 = inlined_call_operand.hbm [shape: bf16[16,384], index: 2, kind: input, shape index: {}]   ;;  %s900_s3 = inlined_call_operand.hbm [shape: bf16[256,256], index: 3, kind: input, shape index: {}]   ;;  %s901_s4 = inlined_call_operand.hbm [shape: f32[9,128], index: 4, kind: input, shape index: {}]   ;;  %s902_s5 = inlined_call_operand.vmem [shape: f32[2,9,128], index: 5, kind: output, shape index: {}]  }
   0x1   :  { %11 = vsyncpa [#allocation5], 0  ;;  %s30_s20 = sshll.u32 %s898_s1, 4  ;;  %s31_s20 = int_to_ptr.hbm [resolvable:$true] %s30_s20 }
   0x2   :  { %12 = vsyncpa [#allocation8], 0  ;;  %s817_s21 = smov [#allocation4]   ;;  %s818_s23 = smov 64  }
   0x3   :  { %s32_s22 = sshll.u32 %s817_s21, 4  ;;  %s819_s24 = smov 4   ;;  %s33_s22 = int_to_ptr.vmem [resolvable:$true] %s32_s22 }
   0x4   :  { %38 = dma.hbm_to_vmem [thread:$0]  %s31_s20, 128, %s33_s22, [#allocation5], %s818_s23, %s818_s23, %s819_s24  }
   0x5   :  { %s56_s27 = sshll.u32 %s900_s3, 4  ;;  %s820_s28 = smov [#allocation7]   ;;  %s57_s27 = int_to_ptr.hbm [resolvable:$true] %s56_s27 }
   0x6   :  { %s58_s29 = sshll.u32 %s820_s28, 4  ;;  %s17_s7 = sshll.u32 %s897_s0, 4  ;;  %s59_s29 = int_to_ptr.vmem [resolvable:$true] %s58_s29  ;;  %s18_s7 = int_to_ptr.hbm [resolvable:$true] %s17_s7 }
   0x7   :  { %s821_s1 = smov 128   ;;  %s822_s8 = smov 8  }
   0x8   :  { %64 = dma.hbm_to_vmem [thread:$0]  %s57_s27, 4096, %s59_s29, [#allocation8], %s821_s1, %s821_s1, %s822_s8  }
   0x9   :  { %s43_s11 = sshll.u32 %s899_s2, 4  ;;  %s823_s12 = smov [#allocation2]   ;;  %s44_s11 = int_to_ptr.hbm [resolvable:$true] %s43_s11 }
   0xa   :  { %s19_s13 = sshll.u32 %s823_s12, 4  ;;  %s824_s3 = smov [#allocation6]   ;;  %s20_s13 = int_to_ptr.vmem [resolvable:$true] %s19_s13 }
   0xb   :  { %25 = dma.hbm_to_vmem [thread:$0]  %s18_s7, 256, %s20_s13, [#allocation3], %s821_s1, %s821_s1, %s822_s8  }
   0xc   :  { %s45_s14 = sshll.u32 %s824_s3, 4  ;;  %s825_s15 = smov 192   ;;  %s46_s14 = int_to_ptr.vmem [resolvable:$true] %s45_s14 }
   0xd   :  { %s826_s16 = smov 12   ;;  %s69_s18 = sshll.u32 %s901_s4, 4  ;;  %s70_s18 = int_to_ptr.hbm [resolvable:$true] %s69_s18 }
   0xe   :  { %51 = dma.hbm_to_vmem [thread:$0]  %s44_s11, 384, %s46_s14, [#allocation5], %s825_s15, %s825_s15, %s826_s16  }
   0xf   :  { %s827_s19 = smov [#allocation9]  }
  0x10   :  { %s71_s20 = sshll.u32 %s827_s19, 4  ;;  %s72_s20 = int_to_ptr.vmem [resolvable:$true] %s71_s20 }
  0x11   :  { %77 = dma.hbm_to_vmem [thread:$0]  %s70_s18, 256, %s72_s20, [#allocation8], %s821_s1, %s821_s1, %s822_s8  }
  0x12   :  { %811 = dma.done.wait [#allocation3], 256  }
  0x13   :  { %812 = vsyncadd [#allocation3], 4294967040 }
  0x14   :  { %813 = dma.done.wait [#allocation5], 512  }
  0x15   :  { %814 = vsyncadd [#allocation5], 4294966784 }
  0x16   :  { %815 = dma.done.wait [#allocation8], 4352  }
  0x17   :  { %816 = vsyncadd [#allocation8], 4294962944  ;;  %v641_v0 = vld [vmem:[#allocation6 + $0x4] sm:$0xf]  ;;  %v501_v1 = vld [vmem:[#allocation6 + $0xc] sm:$0xf0] }
  0x18   :  { %v507_v2 = vld [vmem:[#allocation6 + $0x8] sm:$0xf]  ;;  %v504_v3 = vor.u32 %v641_v0, %v501_v1  ;;  %v643_v4 = vld [vmem:[#allocation6 + $0x10] sm:$0xf0]  ;;  %v499_v5 = vld [vmem:[#allocation6] sm:$0xf] }
  0x19   :  { %v508_v6 = vor.u32 %v643_v4, %v507_v2  ;;  %v640_v7 = vld [vmem:[#allocation4] sm:$0xff]  ;;  %v642_v8 = vld [vmem:[#allocation6 + $0x8] sm:$0xf0]  ;;  %vm126_vm0 = vcmask 130048   ;;  %v570_v10 = vld [vmem:[#allocation7 + $0x70] sm:$0xf] }
  0x1a   :  { %151 = vmatpush.bf16.msra.mxu1 %v504_v3  ;;  %v500_v9 = vor.u32 %v642_v8, %v499_v5  ;;  %v659_v11 = vld [vmem:[#allocation7 + $0x74] sm:$0xf0]  ;;  %v634_v12 = vld [vmem:[#allocation7 + $0xf0] sm:$0xf]  ;;  %v658_v15 = vld [vmem:[#allocation7 + $0x74] sm:$0xf] }
  0x1b   :  { %165 = vmatpush.bf16.msra.mxu2 %v508_v6  ;;  %v571_v13 = vor.u32 %v659_v11, %v570_v10  ;;  %v675_v14 = vld [vmem:[#allocation7 + $0xf4] sm:$0xf0]  ;;  %v572_v16 = vld [vmem:[#allocation7 + $0x78] sm:$0xf0]  ;;  %v674_v19 = vld [vmem:[#allocation7 + $0xf4] sm:$0xf] }
  0x1c   :  { %137 = vmatpush.bf16.msra.mxu0 %v500_v9  ;;  %v635_v17 = vor.u32 %v675_v14, %v634_v12  ;;  %v575_v18 = vor.u32 %v658_v15, %v572_v16  ;;  %v636_v20 = vld [vmem:[#allocation7 + $0xf8] sm:$0xf0]  ;;  %v562_v22 = vld [vmem:[#allocation7 + $0x60] sm:$0xf]  ;;  %v657_v23 = vld [vmem:[#allocation7 + $0x64] sm:$0xf0] }
  0x1d   :  { %510 = vmatmul.msk.bf16.vlgmr.msra.gmra.mxu1 %vm126_vm0, %v640_v7  ;;  %406 = vmatpush.bf16.msra.mxu3 %v571_v13  ;;  %v639_v21 = vor.u32 %v674_v19, %v636_v20  ;;  %v626_v24 = vld [vmem:[#allocation7 + $0xe0] sm:$0xf]  ;;  %v563_v25 = vor.u32 %v657_v23, %v562_v22  ;;  %v673_v26 = vld [vmem:[#allocation7 + $0xe4] sm:$0xf0]  ;;  %v656_v27 = vld [vmem:[#allocation7 + $0x64] sm:$0xf] }
  0x1e   :  { %511 = vmatmul.msk.bf16.vlgmr.msra.gmra.mxu2 %vm126_vm0, %v640_v7  ;;  %434 = vmatpush.bf16.msrb.mxu1 %v575_v18  ;;  %v564_v28 = vld [vmem:[#allocation7 + $0x68] sm:$0xf0]  ;;  %v627_v29 = vor.u32 %v673_v26, %v626_v24  ;;  %v672_v31 = vld [vmem:[#allocation7 + $0xe4] sm:$0xf]  ;;  %v554_v34 = vld [vmem:[#allocation7 + $0x50] sm:$0xf] }
  0x1f   :  { %509 = vmatmul.msk.bf16.vlgmr.msra.gmra.mxu0 %vm126_vm0, %v640_v7  ;;  %448 = vmatpush.bf16.msrb.mxu2 %v639_v21  ;;  %v567_v30 = vor.u32 %v656_v27, %v564_v28  ;;  %v628_v32 = vld [vmem:[#allocation7 + $0xe8] sm:$0xf0]  ;;  %v655_v35 = vld [vmem:[#allocation7 + $0x54] sm:$0xf0]  ;;  %v618_v36 = vld [vmem:[#allocation7 + $0xd0] sm:$0xf] }
  0x20   :  { %420 = vmatpush.bf16.msrb.mxu0 %v635_v17  ;;  %v631_v33 = vor.u32 %v672_v31, %v628_v32  ;;  %v555_v37 = vor.u32 %v655_v35, %v554_v34  ;;  %v671_v38 = vld [vmem:[#allocation7 + $0xd4] sm:$0xf0]  ;;  %v654_v39 = vld [vmem:[#allocation7 + $0x54] sm:$0xf]  ;;  %v556_v40 = vld [vmem:[#allocation7 + $0x58] sm:$0xf0] }
  0x21   :  { %407 = vmatpush.bf16.msra.mxu3 %v563_v25  ;;  %v619_v41 = vor.u32 %v671_v38, %v618_v36  ;;  %v559_v42 = vor.u32 %v654_v39, %v556_v40  ;;  %v670_v43 = vld [vmem:[#allocation7 + $0xd4] sm:$0xf]  ;;  %v620_v44 = vld [vmem:[#allocation7 + $0xd8] sm:$0xf0]  ;;  %v546_v46 = vld [vmem:[#allocation7 + $0x40] sm:$0xf] }
  0x22   :  { %435 = vmatpush.bf16.msrb.mxu1 %v567_v30  ;;  %v623_v45 = vor.u32 %v670_v43, %v620_v44  ;;  %v653_v47 = vld [vmem:[#allocation7 + $0x44] sm:$0xf0]  ;;  %v610_v48 = vld [vmem:[#allocation7 + $0xc0] sm:$0xf]  ;;  %v652_v51 = vld [vmem:[#allocation7 + $0x44] sm:$0xf] }
  0x23   :  { %449 = vmatpush.bf16.msrb.mxu2 %v631_v33  ;;  %v547_v49 = vor.u32 %v653_v47, %v546_v46  ;;  %v669_v50 = vld [vmem:[#allocation7 + $0xc4] sm:$0xf0]  ;;  %v548_v52 = vld [vmem:[#allocation7 + $0x48] sm:$0xf0]  ;;  %v668_v55 = vld [vmem:[#allocation7 + $0xc4] sm:$0xf] }
  0x24   :  { %421 = vmatpush.bf16.msrb.mxu0 %v627_v29  ;;  %v611_v53 = vor.u32 %v669_v50, %v610_v48  ;;  %v551_v54 = vor.u32 %v652_v51, %v548_v52  ;;  %v612_v56 = vld [vmem:[#allocation7 + $0xc8] sm:$0xf0]  ;;  %v538_v58 = vld [vmem:[#allocation7 + $0x30] sm:$0xf]  ;;  %v651_v59 = vld [vmem:[#allocation7 + $0x34] sm:$0xf0] }
  0x25   :  { %408 = vmatpush.bf16.msra.mxu3 %v555_v37  ;;  %v615_v57 = vor.u32 %v668_v55, %v612_v56  ;;  %v602_v60 = vld [vmem:[#allocation7 + $0xb0] sm:$0xf]  ;;  %v539_v61 = vor.u32 %v651_v59, %v538_v58  ;;  %v667_v62 = vld [vmem:[#allocation7 + $0xb4] sm:$0xf0]  ;;  %v650_v0 = vld [vmem:[#allocation7 + $0x34] sm:$0xf] }
  0x26   :  { %436 = vmatpush.bf16.msrb.mxu1 %v559_v42  ;;  %v603_v63 = vor.u32 %v667_v62, %v602_v60  ;;  %v540_v1 = vld [vmem:[#allocation7 + $0x38] sm:$0xf0]  ;;  %v666_v2 = vld [vmem:[#allocation7 + $0xb4] sm:$0xf]  ;;  %v530_v6 = vld [vmem:[#allocation7 + $0x20] sm:$0xf] }
  0x27   :  { %450 = vmatpush.bf16.msrb.mxu2 %v623_v45  ;;  %v543_v3 = vor.u32 %v650_v0, %v540_v1  ;;  %v604_v4 = vld [vmem:[#allocation7 + $0xb8] sm:$0xf0]  ;;  %v649_v7 = vld [vmem:[#allocation7 + $0x24] sm:$0xf0]  ;;  %v594_v8 = vld [vmem:[#allocation7 + $0xa0] sm:$0xf] }
  0x28   :  { %422 = vmatpush.bf16.msrb.mxu0 %v619_v41  ;;  %v607_v5 = vor.u32 %v666_v2, %v604_v4  ;;  %v531_v9 = vor.u32 %v649_v7, %v530_v6  ;;  %v665_v10 = vld [vmem:[#allocation7 + $0xa4] sm:$0xf0]  ;;  %v648_v11 = vld [vmem:[#allocation7 + $0x24] sm:$0xf]  ;;  %v532_v12 = vld [vmem:[#allocation7 + $0x28] sm:$0xf0] }
  0x29   :  { %409 = vmatpush.bf16.msra.mxu3 %v547_v49  ;;  %v595_v13 = vor.u32 %v665_v10, %v594_v8  ;;  %v535_v14 = vor.u32 %v648_v11, %v532_v12  ;;  %v664_v15 = vld [vmem:[#allocation7 + $0xa4] sm:$0xf]  ;;  %v596_v16 = vld [vmem:[#allocation7 + $0xa8] sm:$0xf0]  ;;  %v522_v19 = vld [vmem:[#allocation7 + $0x10] sm:$0xf] }
  0x2a   :  { %437 = vmatpush.bf16.msrb.mxu1 %v551_v54  ;;  %v599_v18 = vor.u32 %v664_v15, %v596_v16  ;;  %v647_v20 = vld [vmem:[#allocation7 + $0x14] sm:$0xf0]  ;;  %v586_v21 = vld [vmem:[#allocation7 + $0x90] sm:$0xf]  ;;  %v646_v24 = vld [vmem:[#allocation7 + $0x14] sm:$0xf] }
  0x2b   :  { %451 = vmatpush.bf16.msrb.mxu2 %v615_v57  ;;  %v523_v22 = vor.u32 %v647_v20, %v522_v19  ;;  %v663_v23 = vld [vmem:[#allocation7 + $0x94] sm:$0xf0]  ;;  %v524_v25 = vld [vmem:[#allocation7 + $0x18] sm:$0xf0]  ;;  %v662_v29 = vld [vmem:[#allocation7 + $0x94] sm:$0xf] }
  0x2c   :  { %423 = vmatpush.bf16.msrb.mxu0 %v611_v53  ;;  %v587_v27 = vor.u32 %v663_v23, %v586_v21  ;;  %v527_v28 = vor.u32 %v646_v24, %v524_v25  ;;  %v588_v30 = vld [vmem:[#allocation7 + $0x98] sm:$0xf0]  ;;  %v514_v34 = vld [vmem:[#allocation7] sm:$0xf]  ;;  %v645_v35 = vld [vmem:[#allocation7 + $0x4] sm:$0xf0]  ;;  %v464_v21 = vlaneseq }
  0x2d   :  { %410 = vmatpush.bf16.msra.mxu3 %v539_v61  ;;  %v591_v32 = vor.u32 %v662_v29, %v588_v30  ;;  %v578_v36 = vld [vmem:[#allocation7 + $0x80] sm:$0xf]  ;;  %v515_v37 = vor.u32 %v645_v35, %v514_v34  ;;  %v661_v38 = vld [vmem:[#allocation7 + $0x84] sm:$0xf0]  ;;  %v644_v39 = vld [vmem:[#allocation7 + $0x4] sm:$0xf] }
  0x2e   :  { %438 = vmatpush.bf16.msrb.mxu1 %v543_v3  ;;  %v516_v40 = vld [vmem:[#allocation7 + $0x8] sm:$0xf0]  ;;  %v579_v42 = vor.u32 %v661_v38, %v578_v36  ;;  %v660_v44 = vld [vmem:[#allocation7 + $0x84] sm:$0xf]  ;;  %v174_v0 = vld [vmem:[#allocation2] sm:$0xff]  ;;  %v465_v24 = vshrl.u32 %v464_v21, 7 }
  0x2f   :  { %452 = vmatpush.bf16.msrb.mxu2 %v607_v5  ;;  %v519_v43 = vor.u32 %v644_v39, %v516_v40  ;;  %v580_v45 = vld [vmem:[#allocation7 + $0x88] sm:$0xf0]  ;;  %v175_v8 = vld [vmem:[#allocation2 + $0x8] sm:$0xff] }
  0x30   :  { %424 = vmatpush.bf16.msrb.mxu0 %v603_v63  ;;  %v583_v46 = vor.u32 %v660_v44, %v580_v45  ;;  %vm466_vm7 = vcmp.gt.s32.totalorder %v465_v24, 0 }
  0x31   :  { %411 = vmatpush.bf16.msra.mxu3 %v531_v9 }
  0x32   :  { %439 = vmatpush.bf16.msrb.mxu1 %v535_v14 }
  0x33   :  { %453 = vmatpush.bf16.msrb.mxu2 %v599_v18 }
  0x34   :  { %425 = vmatpush.bf16.msrb.mxu0 %v595_v13 }
  0x35   :  { %412 = vmatpush.bf16.msra.mxu3 %v523_v22  ;;  %v472_v22 = vld [vmem:[#allocation9 + $0x8] sm:$0x1] }
  0x36   :  { %440 = vmatpush.bf16.msrb.mxu1 %v527_v28 }
  0x37   :  { %454 = vmatpush.bf16.msrb.mxu2 %v591_v32 }
  0x38   :  { %426 = vmatpush.bf16.msrb.mxu0 %v587_v27 }
  0x39   :  { %413 = vmatpush.bf16.msra.mxu3 %v515_v37 }
  0x3a   :  { %441 = vmatpush.bf16.msrb.mxu1 %v519_v43 }
  0x3b   :  { %455 = vmatpush.bf16.msrb.mxu2 %v583_v46 }
  0x3c   :  { %427 = vmatpush.bf16.msrb.mxu0 %v579_v42 }
  0x9a   :  { %v873_v17 = vpop.f32.mrf.mxu1 }
  0x9b   :  { %v178_v26 = vmul.f32 %v873_v17, %v873_v17 }
  0x9c   :  { %v139_v56 = vpop.f32.mrf.mxu0 }
  0x9d   :  { %v172_v62 = vmax.f32 %v139_v56, 0.0 }
  0x9f   :  { %v176_v4 = vmul.f32 %v174_v0, %v172_v62 }
  0xa1   :  { %v877_v31 = vpop.f32.mrf.mxu2 }
  0xa2   :  { %v180_v33 = vmul.f32 %v877_v31, %v877_v31  ;;  %v155_v48 = vpop.f32.mrf.mxu1 }
  0xa3   :  { %v179_v50 = vmul.f32 %v155_v48, %v155_v48 }
  0xa4   :  { %v182_v41 = vadd.f32 %v180_v33, %v178_v26  ;;  %v141_v2 = vpop.f32.mrf.mxu0  ;;  %v480_v26 = vrot.slane %v472_v22, 1  ;;  %v471_v33 = vld [vmem:[#allocation9] sm:$0xff] }
  0xa5   :  { %v173_v5 = vmax.f32 %v141_v2, 0.0 }
  0xa6   :  { %v184_v47 = vadd.f32 1e-16, %v182_v41 }
  0xa7   :  { %v177_v11 = vmul.f32 %v175_v8, %v173_v5 }
  0xa8   :  { %687 = vrsqrt.f32 %v184_v47  ;;  %vm192_vm2 = vweird.f32 %v184_v47 }
  0xa9   :  { %v169_v49 = vpop.f32.mrf.mxu2 }
  0xaa   :  { %v181_v51 = vmul.f32 %v169_v49, %v169_v49 }
  0xac   :  { %v183_v52 = vadd.f32 %v181_v51, %v179_v50 }
  0xae   :  { %v688_v53 = vpop.eup %687  ;;  %v185_v54 = vadd.f32 1e-16, %v183_v52 }
  0xaf   :  { %v187_v55 = vmul.f32 %v688_v53, %v184_v47  ;;  %vm193_vm1 = vweird.f32 %v688_v53 }
  0xb0   :  { %689 = vrsqrt.f32 %v185_v54  ;;  %vm194_vm3 = vmor %vm192_vm2, %vm193_vm1  ;;  %vm202_vm5 = vweird.f32 %v185_v54 }
  0xb1   :  { %v188_v57 = vmul.f32 %v688_v53, %v187_v55 }
  0xb3   :  { %v189_v58 = vmul.f32 0.5, %v188_v57 }
  0xb5   :  { %v190_v59 = vsub.f32 1.5, %v189_v58 }
  0xb6   :  { %v690_v60 = vpop.eup %689 }
  0xb7   :  { %v197_v61 = vmul.f32 %v690_v60, %v185_v54  ;;  %v191_v1 = vmul.f32 %v688_v53, %v190_v59  ;;  %vm203_vm4 = vweird.f32 %v690_v60 }
  0xb8   :  { %vm204_vm6 = vmor %vm202_vm5, %vm203_vm4 }
  0xb9   :  { %v198_v63 = vmul.f32 %v690_v60, %v197_v61  ;;  %v195_v7 = vsel %vm194_vm3, %v688_v53, %v191_v1 }
  0xba   :  { %v206_v10 = vmul.f32 %v195_v7, %v176_v4 }
  0xbb   :  { %v199_v3 = vmul.f32 0.5, %v198_v63 }
  0xbc   :  { %v208_v14 = vmul.f32 %v206_v10, %v873_v17  ;;  %v210_v16 = vmul.f32 %v206_v10, %v877_v31 }
  0xbd   :  { %v200_v6 = vsub.f32 1.5, %v199_v3 }
  0xbf   :  { %v201_v9 = vmul.f32 %v690_v60, %v200_v6 }
  0xc1   :  { %v205_v12 = vsel %vm204_vm6, %v690_v60, %v201_v9 }
  0xc2   :  { %v207_v13 = vmul.f32 %v205_v12, %v177_v11 }
  0xc4   :  { %v209_v15 = vmul.f32 %v207_v13, %v155_v48  ;;  %v211_v18 = vmul.f32 %v207_v13, %v169_v49 }
  0xc6   :  { %v212_v19 = vpack.c.bf16 %v209_v15, %v208_v14  ;;  %v213_v20 = vpack.c.bf16 %v211_v18, %v210_v16 }
  0xc8   :  { %414 = vmatmul.bf16.vlgmr.msra.gmra.mxu3 %v212_v19  ;;  %428 = vmatmul.bf16.vlgmr.msrb.gmra.mxu0 %v213_v20 }
  0xc9   :  { %442 = vmatmul.bf16.vlgmr.msrb.gmra.mxu1 %v212_v19  ;;  %456 = vmatmul.bf16.vlgmr.msrb.gmra.mxu2 %v213_v20 }
 0x145   :  { %v429_v28 = vpop.f32.mrf.mxu0 }
 0x146   :  { %v443_v23 = vpop.f32.mrf.mxu1 }
 0x14b   :  { %v415_v25 = vpop.f32.mrf.mxu3 }
 0x14c   :  { %v457_v27 = vpop.f32.mrf.mxu2  ;;  %v430_v31 = vadd.f32 %v429_v28, %v415_v25 }
 0x14d   :  { %v458_v29 = vadd.f32 %v457_v27, %v443_v23  ;;  %v431_v40 = vpop.f32.mrf.mxu0 }
 0x14e   :  { %v445_v36 = vpop.f32.mrf.mxu1 }
 0x14f   :  { %v462_v17 = vrot.slane %v458_v29, 7  ;;  %v482_v30 = vmul.f32 %v480_v26, %v458_v29 }
 0x151   :  { %v469_v32 = vsel %vm466_vm7, %v462_v17, 0.0  ;;  %484 = vst [vmem:[%s902_s5 + $0x1] sm:$0x80] %v482_v30 }
 0x152   :  { %v473_v34 = vadd.f32 %v469_v32, %v430_v31 }
 0x153   :  { %v417_v38 = vpop.f32.mrf.mxu3 }
 0x154   :  { %v475_v35 = vmul.f32 %v473_v34, %v471_v33  ;;  %v459_v37 = vpop.f32.mrf.mxu2  ;;  %v432_v43 = vadd.f32 %v431_v40, %v417_v38 }
 0x155   :  { %v460_v39 = vadd.f32 %v459_v37, %v445_v36 }
 0x156   :  { %477 = vst [vmem:[%s902_s5] sm:$0xff] %v475_v35 }
 0x157   :  { %v463_v41 = vrot.slane %v460_v39, 7  ;;  %v483_v42 = vmul.f32 %v480_v26, %v460_v39 }
 0x159   :  { %v470_v44 = vsel %vm466_vm7, %v463_v41, 0.0  ;;  %485 = vst [vmem:[%s902_s5 + $0x11] sm:$0x80] %v483_v42 }
 0x15a   :  { %v474_v45 = vadd.f32 %v470_v44, %v432_v43 }
 0x15c   :  { %v476_v46 = vmul.f32 %v474_v45, %v471_v33 }
 0x15e   :  { %478 = vst [vmem:[%s902_s5 + $0x10] sm:$0xff] %v476_v46 }
 0x15f   :  { %490 = vsyncpa [#allocation3], 1 }
 0x160   :  { %491 = vsyncpa [#allocation5], 1 }
 0x161   :  { %492 = vsyncpa [#allocation8], 1 }

</bundles_post_ra>
